<compile_context>
chip_gen: v5e
topology: v5e:2x2
jax: 0.10.0
libtpu: 0.0.40
codegen_flags: <defaults>
</compile_context>

<pallas_src>
import functools
import math

import jax
import jax.numpy as jnp
from jax.experimental import pallas as pl
from jax.experimental.pallas import tpu as pltpu

ACT_DTYPE = jnp.bfloat16          # HBM activation / weight storage + MXU operands
VMEM_LIMIT = 64 * 1024 * 1024     # fits every generation (v7x has 64 MiB / TC)


def _round_up(x, m):
    return (x + m - 1) // m * m


# ----------------------------------------------------------------------------
# 1x1 conv:  tiled (TM, K) @ (K, Cout) + bias (+ ReLU)
# ----------------------------------------------------------------------------
def _mm_bias_kernel(x_ref, w_ref, b_ref, o_ref, *, relu):
    acc = jnp.dot(x_ref[...], w_ref[...], preferred_element_type=jnp.float32)
    acc = acc + b_ref[...]
    if relu:
        acc = jnp.maximum(acc, 0.0)
    o_ref[...] = acc.astype(o_ref.dtype)


def matmul_bias(x2d, w, b, relu):
    """x2d: (M, K) bf16, w: (K, Cout) bf16, b: (Cout,) f32 -> (M, Cout) bf16."""
    M, K = x2d.shape
    Cout = w.shape[1]
    TM = min(1024, _round_up(M, 8))
    Mp = _round_up(M, TM)
    if Mp != M:
        x2d = jnp.pad(x2d, ((0, Mp - M), (0, 0)))
    out = pl.pallas_call(
        functools.partial(_mm_bias_kernel, relu=relu),
        out_shape=jax.ShapeDtypeStruct((Mp, Cout), ACT_DTYPE),
        grid=(Mp // TM,),
        in_specs=[
            pl.BlockSpec((TM, K), lambda i: (i, 0)),
            pl.BlockSpec((K, Cout), lambda i: (0, 0)),
            pl.BlockSpec((1, Cout), lambda i: (0, 0)),
        ],
        out_specs=pl.BlockSpec((TM, Cout), lambda i: (i, 0)),
        compiler_params=pltpu.CompilerParams(
            dimension_semantics=("parallel",),
            vmem_limit_bytes=VMEM_LIMIT),
    )(x2d, w, b.reshape(1, Cout).astype(jnp.float32))
    return out if Mp == M else out[:M]


def conv1x1(x, p, relu=True):
    N, H, W, C = x.shape
    w = p["w"].reshape(C, -1).astype(ACT_DTYPE)
    y = matmul_bias(x.astype(ACT_DTYPE).reshape(-1, C), w, p["b"], relu)
    return y.reshape(N, H, W, -1)


# ----------------------------------------------------------------------------
# Shared band layout for 3x3 conv / 3x3 max-pool (padding=1, stride s).
# The padded input is split into s x s stride-phases in the wrapper so every
# in-kernel tap is one contiguous 2D slice of a (rows*Ws, Cin) band.
# ----------------------------------------------------------------------------
def _band_layout(H, W, s, cap=16):
    Ho = (H - 1) // s + 1
    Wo = (W - 1) // s + 1
    Ws = -(-(W + 2) // s)              # ceil((W+2)/s): phase width
    max_o = 2 // s                     # max in-phase tap offset (rows & cols)
    th = min(cap, Ho)                  # fixed output-row tile
    Hop = _round_up(Ho, th)
    nt = Hop // th
    rows_in = th + max_o
    Hs = Hop + max_o + 1               # phase rows incl. round-up + DMA slack
    band_rows = rows_in * Ws + max_o   # flattened (rows, Ws) band length
    p_use = min(s, 3)                  # phases actually touched by a 3x3 window
    return dict(Ho=Ho, Wo=Wo, Ws=Ws, max_o=max_o, th=th, Hop=Hop, nt=nt,
                Hs=Hs, band_rows=band_rows, p_use=p_use, s=s)


def _phase_split(x, m, pad_value):
    """(N,H,W,C) -> (N, p_use, p_use, Hs*Ws, C), padded + stride-phase split."""
    N, H, W, C = x.shape
    s, Hs, Ws, p_use = m["s"], m["Hs"], m["Ws"], m["p_use"]
    xp = jnp.pad(x, ((0, 0), (1, Hs * s - H - 1), (1, Ws * s - W - 1), (0, 0)),
                 constant_values=pad_value)
    xph = xp.reshape(N, Hs, s, Ws, s, C).transpose(0, 2, 4, 1, 3, 5)
    xph = xph[:, :p_use, :p_use]
    # TODO(synk): this pad + phase-split transpose is an extra XLA HBM pass; it
    # could be folded into the band DMA itself with clamped/strided copies.
    return xph.reshape(N, p_use, p_use, Hs * Ws, C)


def _band_dma(x_hbm, band, sem, n, r, nt, th, Ws, band_rows):
    """Double-buffered halo-band fetch (P4): prime r, prefetch r+1, wait r."""
    slot = r % 2

    def band_copy(tile, slt):
        return pltpu.make_async_copy(
            x_hbm.at[n, :, :, pl.ds(tile * (th * Ws), band_rows), :],
            band.at[slt], sem.at[slt])

    @pl.when(r == 0)
    def _():
        band_copy(r, slot).start()

    @pl.when(r + 1 < nt)
    def _():
        band_copy(jnp.minimum(r + 1, nt - 1), 1 - slot).start()

    band_copy(r, slot).wait()
    return slot


# ----------------------------------------------------------------------------
# 3x3 conv: 9 band-wide matmuls, bias + optional ReLU
# ----------------------------------------------------------------------------
def _conv3x3_kernel(x_hbm, w_ref, b_ref, o_ref, band, sem, *, s, th, Ws,
                    band_rows, relu):
    n = pl.program_id(0)
    r = pl.program_id(1)
    nt = pl.num_programs(1)
    slot = _band_dma(x_hbm, band, sem, n, r, nt, th, Ws, band_rows)

    cout = o_ref.shape[-1]
    acc = jnp.zeros((th * Ws, cout), jnp.float32)
    for dy in range(3):
        for dx in range(3):
            py, oy = dy % s, dy // s
            px, ox = dx % s, dx // s
            tap = band[slot, py, px, pl.ds(oy * Ws + ox, th * Ws), :]
            acc = acc + jnp.dot(tap, w_ref[dy * 3 + dx],
                                preferred_element_type=jnp.float32)
    acc = acc + b_ref[...]
    if relu:
        acc = jnp.maximum(acc, 0.0)
    o_ref[0] = acc.astype(o_ref.dtype)


def conv3x3(x, p, stride=1, relu=True):
    """3x3 conv, padding=1, given stride, bias + optional ReLU (NHWC, bf16)."""
    N, H, W, Cin = x.shape
    Cout = p["b"].shape[0]
    m = _band_layout(H, W, stride)
    s, th, Ws = m["s"], m["th"], m["Ws"]
    xph = _phase_split(x.astype(ACT_DTYPE), m, 0.0)
    w9 = p["w"].reshape(9, Cin, Cout).astype(ACT_DTYPE)
    bias = p["b"].reshape(1, Cout).astype(jnp.float32)
    # TODO(synk): for very large channel counts (e.g. 768x768 on v7x) the
    # resident (9, Cin, Cout) weight should additionally be tiled over Cout/K.
    out = pl.pallas_call(
        functools.partial(_conv3x3_kernel, s=s, th=th, Ws=Ws,
                          band_rows=m["band_rows"], relu=relu),
        out_shape=jax.ShapeDtypeStruct((N, m["Hop"] * Ws, Cout), ACT_DTYPE),
        grid=(N, m["nt"]),
        in_specs=[
            pl.BlockSpec(memory_space=pl.ANY),
            pl.BlockSpec((9, Cin, Cout), lambda n, r: (0, 0, 0)),
            pl.BlockSpec((1, Cout), lambda n, r: (0, 0)),
        ],
        out_specs=pl.BlockSpec((1, th * Ws, Cout), lambda n, r: (n, r, 0)),
        scratch_shapes=[
            pltpu.VMEM((2, m["p_use"], m["p_use"], m["band_rows"], Cin),
                       ACT_DTYPE),
            pltpu.SemaphoreType.DMA((2,)),
        ],
        compiler_params=pltpu.CompilerParams(
            dimension_semantics=("parallel", "arbitrary"),
            vmem_limit_bytes=VMEM_LIMIT),
    )(xph, w9, bias)
    return out.reshape(N, m["Hop"], Ws, Cout)[:, :m["Ho"], :m["Wo"], :]


# ----------------------------------------------------------------------------
# 3x3 max-pool, padding=1: 9 band-wide maximums
# ----------------------------------------------------------------------------
def _maxpool3_kernel(x_hbm, o_ref, band, sem, *, s, th, Ws, band_rows):
    n = pl.program_id(0)
    r = pl.program_id(1)
    nt = pl.num_programs(1)
    slot = _band_dma(x_hbm, band, sem, n, r, nt, th, Ws, band_rows)

    acc = band[slot, 0, 0, pl.ds(0, th * Ws), :]
    for dy in range(3):
        for dx in range(3):
            if dy == 0 and dx == 0:
                continue
            py, oy = dy % s, dy // s
            px, ox = dx % s, dx // s
            acc = jnp.maximum(
                acc, band[slot, py, px, pl.ds(oy * Ws + ox, th * Ws), :])
    o_ref[0] = acc.astype(o_ref.dtype)


def maxpool3(x, stride):
    """F.max_pool2d(x, 3, stride=stride, padding=1) on NHWC (bf16)."""
    N, H, W, C = x.shape
    m = _band_layout(H, W, stride)
    s, th, Ws = m["s"], m["th"], m["Ws"]
    xph = _phase_split(x.astype(ACT_DTYPE), m, -jnp.inf)
    out = pl.pallas_call(
        functools.partial(_maxpool3_kernel, s=s, th=th, Ws=Ws,
                          band_rows=m["band_rows"]),
        out_shape=jax.ShapeDtypeStruct((N, m["Hop"] * Ws, C), ACT_DTYPE),
        grid=(N, m["nt"]),
        in_specs=[pl.BlockSpec(memory_space=pl.ANY)],
        out_specs=pl.BlockSpec((1, th * Ws, C), lambda n, r: (n, r, 0)),
        scratch_shapes=[
            pltpu.VMEM((2, m["p_use"], m["p_use"], m["band_rows"], C),
                       ACT_DTYPE),
            pltpu.SemaphoreType.DMA((2,)),
        ],
        compiler_params=pltpu.CompilerParams(
            dimension_semantics=("parallel", "arbitrary"),
            vmem_limit_bytes=VMEM_LIMIT),
    )(xph)
    return out.reshape(N, m["Hop"], Ws, C)[:, :m["Ho"], :m["Wo"], :]


# ----------------------------------------------------------------------------
# Fused ASFF head: weight_level_i 1x1 convs + weight_levels 1x1 conv + softmax
# over the 4 levels + weighted sum, with nearest ROW upsampling fused via the
# BlockSpec index_map (coarse-row blocks + static f//k row indexing).
# Width replication of upsampled levels is pre-done in the wrapper on the
# small (1/k-sized) tensor.
# ----------------------------------------------------------------------------
def _asff_fuse_kernel(l0, l1, l2, l3, wv_ref, bv_ref, wl_ref, bl_ref, o_ref,
                      *, ks, tr):
    l_refs = (l0, l1, l2, l3)
    # Per-coarse-row logit contributions: relu(x @ Wv_i + bv_i) @ Wl_i -> (W,4)
    contrib = []
    for i in range(4):
        wv = wv_ref[i]                       # (C, cc) bf16
        bv = bv_ref[i]                       # (1, cc) f32
        wl = wl_ref[i]                       # (cc, 4) f32
        rows = []
        for cr in range(tr // ks[i]):
            x_row = l_refs[i][0, cr]         # (W, C) bf16
            v = jnp.dot(x_row, wv, preferred_element_type=jnp.float32) + bv
            v = jnp.maximum(v, 0.0)          # ConvModule ReLU
            rows.append(jnp.dot(v, wl, preferred_element_type=jnp.float32))
        contrib.append(rows)
    bl = bl_ref[...]                         # (1, 4) f32

    for f in range(tr):                      # fine output rows of this tile
        logits = (bl + contrib[0][f // ks[0]] + contrib[1][f // ks[1]]
                  + contrib[2][f // ks[2]] + contrib[3][f // ks[3]])   # (W,4)
        c = [logits[:, i:i + 1] for i in range(4)]
        mx = jnp.maximum(jnp.maximum(c[0], c[1]), jnp.maximum(c[2], c[3]))
        e = [jnp.exp(ci - mx) for ci in c]
        inv = 1.0 / (e[0] + e[1] + e[2] + e[3])
        fused = (l_refs[0][0, f // ks[0]].astype(jnp.float32) * (e[0] * inv)
                 + l_refs[1][0, f // ks[1]].astype(jnp.float32) * (e[1] * inv)
                 + l_refs[2][0, f // ks[2]].astype(jnp.float32) * (e[2] * inv)
                 + l_refs[3][0, f // ks[3]].astype(jnp.float32) * (e[3] * inv))
        o_ref[0, f] = fused.astype(o_ref.dtype)


def fuse_asff(levels, p, out_hw):
    """levels: list of 4 (arr, k) with arr (N, H//k, W, C) bf16."""
    H, W = out_hw
    arr0, _ = levels[0]
    N = arr0.shape[0]
    C = arr0.shape[-1]
    ks = tuple(int(k) for _, k in levels)
    L = 1
    for k in ks:
        L = L * k // math.gcd(L, k)          # lcm of scale factors (divides H)
    tr = L
    while tr * 2 <= min(8, H) and H % (tr * 2) == 0:
        tr *= 2
    cc = p["weight_level_0"]["w"].shape[-1]
    wv = jnp.stack([p[f"weight_level_{i}"]["w"].reshape(C, cc)
                    for i in range(4)]).astype(ACT_DTYPE)
    bv = jnp.stack([p[f"weight_level_{i}"]["b"].reshape(1, cc)
                    for i in range(4)]).astype(jnp.float32)
    wl = p["weight_levels"]["w"].reshape(4, cc, 4).astype(jnp.float32)
    bl = p["weight_levels"]["b"].reshape(1, 4).astype(jnp.float32)

    in_specs = [pl.BlockSpec((1, tr // k, W, C), lambda n, r: (n, r, 0, 0))
                for _, k in levels]
    in_specs += [
        pl.BlockSpec((4, C, cc), lambda n, r: (0, 0, 0)),
        pl.BlockSpec((4, 1, cc), lambda n, r: (0, 0, 0)),
        pl.BlockSpec((4, cc, 4), lambda n, r: (0, 0, 0)),
        pl.BlockSpec((1, 4), lambda n, r: (0, 0)),
    ]
    out = pl.pallas_call(
        functools.partial(_asff_fuse_kernel, ks=ks, tr=tr),
        out_shape=jax.ShapeDtypeStruct((N, H, W, C), ACT_DTYPE),
        grid=(N, H // tr),
        in_specs=in_specs,
        out_specs=pl.BlockSpec((1, tr, W, C), lambda n, r: (n, r, 0, 0)),
        compiler_params=pltpu.CompilerParams(
            dimension_semantics=("parallel", "parallel"),
            vmem_limit_bytes=VMEM_LIMIT),
    )(*[a for a, _ in levels], wv, bv, wl, bl)
    return out


# ----------------------------------------------------------------------------
# Plain-JAX glue: nearest resize (lateral path) and level prep for the fuse.
# ----------------------------------------------------------------------------
def nearest_resize(x, size):
    N, H, W, C = x.shape
    Ho, Wo = size
    ri = (jnp.arange(Ho) * H) // Ho
    ci = (jnp.arange(Wo) * W) // Wo
    return x[:, ri][:, :, ci]


def prep_level(x, tgt_hw):
    """Return (arr, k): arr has target width; rows stay coarse (factor k)."""
    N, h, w, C = x.shape
    H, W = tgt_hw
    if (h, w) == (H, W):
        return x, 1
    if H % h == 0 and W % w == 0 and (H // h) == (W // w):
        k = H // h
        # Width replication done here on the small tensor (1/k of full size);
        # row replication is fused into the ASFF kernel via the index_map.
        # TODO(synk): width replication could also be fused in-kernel.
        return jnp.repeat(x, k, axis=2), k
    # TODO(synk): non-integer / anisotropic scale factors fall back to resize.
    return nearest_resize(x, (H, W)), 1


# ----------------------------------------------------------------------------
# Deterministic parameter construction
# ----------------------------------------------------------------------------
def _keygen(key):
    counter = [0]

    def nxt():
        counter[0] += 1
        return jax.random.fold_in(key, counter[0])

    return nxt


def init_conv(nxt, kh, kw, cin, cout):
    w = jax.random.normal(nxt(), (kh, kw, cin, cout), jnp.float32) / jnp.sqrt(kh * kw * cin)
    b = jax.random.normal(nxt(), (cout,), jnp.float32) * 0.01
    return {"w": w, "b": b}


def init_asff(nxt, level, dims, compress_c=16):
    inter = dims[level]
    p = {"level": level}
    if level == 0:
        p["stride_level_1"] = init_conv(nxt, 3, 3, dims[1], inter)
        p["stride_level_2"] = init_conv(nxt, 3, 3, dims[2], inter)
        p["stride_level_3"] = init_conv(nxt, 3, 3, dims[3], inter)
        p["expand"] = init_conv(nxt, 3, 3, inter, dims[0])
    elif level == 1:
        p["compress_level_0"] = init_conv(nxt, 1, 1, dims[0], inter)
        p["stride_level_2"] = init_conv(nxt, 3, 3, dims[2], inter)
        p["stride_level_3"] = init_conv(nxt, 3, 3, dims[3], inter)
        p["expand"] = init_conv(nxt, 3, 3, inter, dims[1])
    elif level == 2:
        p["compress_level_0"] = init_conv(nxt, 1, 1, dims[0], inter)
        p["compress_level_1"] = init_conv(nxt, 1, 1, dims[1], inter)
        p["stride_level_3"] = init_conv(nxt, 3, 3, dims[3], inter)
        p["expand"] = init_conv(nxt, 3, 3, inter, dims[2])
    else:
        p["compress_level_0"] = init_conv(nxt, 1, 1, dims[0], inter)
        p["compress_level_1"] = init_conv(nxt, 1, 1, dims[1], inter)
        p["compress_level_2"] = init_conv(nxt, 1, 1, dims[2], inter)
        p["expand"] = init_conv(nxt, 3, 3, inter, dims[3])
    for i in range(4):
        p[f"weight_level_{i}"] = init_conv(nxt, 1, 1, inter, compress_c)
    p["weight_levels"] = init_conv(nxt, 1, 1, compress_c * 4, 4)   # no ReLU
    return p


def init_asfffpn(key, in_channels, out_channels, mid_channels):
    nxt = _keygen(key)
    dims = mid_channels[::-1]
    p = {
        "conv_c2": init_conv(nxt, 1, 1, in_channels[0], mid_channels[0]),
        "conv_c3": init_conv(nxt, 1, 1, in_channels[1], mid_channels[1]),
        "conv_c4": init_conv(nxt, 1, 1, in_channels[2], mid_channels[2]),
        "conv_c5": init_conv(nxt, 1, 1, in_channels[3], mid_channels[3]),
        "lateral": [init_conv(nxt, 1, 1, mid_channels[i], mid_channels[i - 1])
                    for i in range(3, 0, -1)],
    }
    p["asff"] = [init_asff(nxt, lvl, dims) for lvl in range(4)]
    p["fpn_p2"] = init_conv(nxt, 3, 3, mid_channels[0], out_channels)
    p["fpn_p3"] = init_conv(nxt, 3, 3, mid_channels[1], out_channels)
    p["fpn_p4"] = init_conv(nxt, 3, 3, mid_channels[2], out_channels)
    p["fpn_p5"] = init_conv(nxt, 3, 3, mid_channels[3], out_channels)
    return p


# ----------------------------------------------------------------------------
# Forward pass (use_additional_level=True path, the ASFFFPN default)
# ----------------------------------------------------------------------------
# TODO(synk): the `use_additional_level=False` ASFF branches (3-level fusion)
# are not exercised by ASFFFPN's default configuration and are not implemented.
def asff_forward(p, p5, p4, p3, p2):
    level = p["level"]
    if level == 0:
        tgt = p5.shape[1:3]
        lv = [(p5, 1),
              (conv3x3(p4, p["stride_level_1"], stride=2), 1),
              (conv3x3(maxpool3(p3, 2), p["stride_level_2"], stride=2), 1),
              (conv3x3(maxpool3(p2, 4), p["stride_level_3"], stride=2), 1)]
    elif level == 1:
        tgt = p4.shape[1:3]
        lv = [prep_level(conv1x1(p5, p["compress_level_0"]), tgt),
              (p4, 1),
              (conv3x3(p3, p["stride_level_2"], stride=2), 1),
              (conv3x3(maxpool3(p2, 2), p["stride_level_3"], stride=2), 1)]
    elif level == 2:
        tgt = p3.shape[1:3]
        lv = [prep_level(conv1x1(p5, p["compress_level_0"]), tgt),
              prep_level(conv1x1(p4, p["compress_level_1"]), tgt),
              (p3, 1),
              (conv3x3(p2, p["stride_level_3"], stride=2), 1)]
    else:
        tgt = p2.shape[1:3]
        lv = [prep_level(conv1x1(p5, p["compress_level_0"]), tgt),
              prep_level(conv1x1(p4, p["compress_level_1"]), tgt),
              prep_level(conv1x1(p3, p["compress_level_2"]), tgt),
              (p2, 1)]

    fused = fuse_asff(lv, p, tgt)
    return conv3x3(fused, p["expand"], stride=1)


def asfffpn_forward(params, inputs_nhwc):
    c2, c3, c4, c5 = [x.astype(ACT_DTYPE) for x in inputs_nhwc]
    c2 = conv1x1(c2, params["conv_c2"])
    c3 = conv1x1(c3, params["conv_c3"])
    c4 = conv1x1(c4, params["conv_c4"])
    p5 = conv1x1(c5, params["conv_c5"])

    p4 = nearest_resize(conv1x1(p5, params["lateral"][0]), c4.shape[1:3]) + c4
    p3 = nearest_resize(conv1x1(p4, params["lateral"][1]), c3.shape[1:3]) + c3
    p2 = nearest_resize(conv1x1(p3, params["lateral"][2]), c2.shape[1:3]) + c2

    # Matches the PyTorch reference: each ASFF consumes the (possibly already
    # updated) pyramid exactly as the reference reassigns p5/p4/p3 in order.
    p5 = asff_forward(params["asff"][0], p5, p4, p3, p2)
    p4 = asff_forward(params["asff"][1], p5, p4, p3, p2)
    p3 = asff_forward(params["asff"][2], p5, p4, p3, p2)
    p2 = asff_forward(params["asff"][3], p5, p4, p3, p2)

    p2 = conv3x3(p2, params["fpn_p2"], stride=1)
    p3 = conv3x3(p3, params["fpn_p3"], stride=1)
    p4 = conv3x3(p4, params["fpn_p4"], stride=1)
    p5 = conv3x3(p5, params["fpn_p5"], stride=1)

    # F.max_pool2d(out[-1], 1, stride=2) == strided subsampling
    p6 = p5[:, ::2, ::2, :]
    return [o.astype(jnp.float32) for o in (p2, p3, p4, p5, p6)]


# ----------------------------------------------------------------------------
if __name__ == "__main__":
    key = jax.random.PRNGKey(0)

    # Small-shape configuration (ASFF channel pyramid scaled down from 768/384/192/96).
    in_channels = [8, 16, 32, 64]
    mid_channels = [16, 32, 64, 128]
    out_channels = 16
    batch = 2
    spatial = [16, 8, 4, 2]   # c2, c3, c4, c5

    kc2, kc3, kc4, kc5, kp = jax.random.split(key, 5)
    # PyTorch-style NCHW inputs.
    c2 = jax.random.normal(kc2, (batch, in_channels[0], spatial[0], spatial[0]), jnp.float32)
    c3 = jax.random.normal(kc3, (batch, in_channels[1], spatial[1], spatial[1]), jnp.float32)
    c4 = jax.random.normal(kc4, (batch, in_channels[2], spatial[2], spatial[2]), jnp.float32)
    c5 = jax.random.normal(kc5, (batch, in_channels[3], spatial[3], spatial[3]), jnp.float32)

    params = init_asfffpn(kp, in_channels, out_channels, mid_channels)

    # NCHW -> NHWC for the kernels.
    to_nhwc = lambda x: jnp.transpose(x, (0, 2, 3, 1))
    to_nchw = lambda x: jnp.transpose(x, (0, 3, 1, 2))
    outs_nhwc = asfffpn_forward(params, [to_nhwc(c2), to_nhwc(c3), to_nhwc(c4), to_nhwc(c5)])
    outs = [to_nchw(o) for o in outs_nhwc]

    outs = jax.block_until_ready(outs)

    expected = [(batch, out_channels, s, s) for s in (16, 8, 4, 2, 1)]
    assert [tuple(o.shape) for o in outs] == expected, [o.shape for o in outs]
    print("KERNEL_OK")
</pallas_src>

<mosaic_0001>
module attributes {stable_mosaic.version = 11 : i64} {
  func.func @_mm_bias_kernel(%arg0: i32, %arg1: memref<512x8xbf16, #tpu.memory_space<vmem>>, %arg2: memref<8x16xbf16, #tpu.memory_space<vmem>>, %arg3: memref<1x16xf32, #tpu.memory_space<vmem>>, %arg4: memref<512x16xbf16, #tpu.memory_space<vmem>>) attributes {dimension_semantics = [#tpu.dimension_semantics<parallel>], iteration_bounds = array<i64: 1>, scalar_prefetch = 0 : i64, scratch_operands = 0 : i64, tpu.core_type = #tpu.core_type<tc>, window_params = [{transform_indices = @transform_0, window_bounds = array<i64: 512, 8>}, {pipeline_mode = #tpu.pipeline_mode<synchronous>, transform_indices = @transform_1, window_bounds = array<i64: 8, 16>}, {pipeline_mode = #tpu.pipeline_mode<synchronous>, transform_indices = @transform_2, window_bounds = array<i64: 1, 16>}, {transform_indices = @transform_3, window_bounds = array<i64: 512, 16>}]} {
    %c0 = arith.constant 0 : index
    %c0_0 = arith.constant 0 : index
    %0 = vector.load %arg1[%c0, %c0_0] : memref<512x8xbf16, #tpu.memory_space<vmem>>, vector<512x8xbf16>
    %c0_1 = arith.constant 0 : index
    %c0_2 = arith.constant 0 : index
    %1 = vector.load %arg2[%c0_1, %c0_2] : memref<8x16xbf16, #tpu.memory_space<vmem>>, vector<8x16xbf16>
    %cst = arith.constant dense<0.000000e+00> : vector<512x16xf32>
    %2 = tpu.matmul %0, %1, %cst {dimension_numbers = #tpu.dot_dimension_numbers<[1], [0], [0], [1], [0, 0, 1, 1], [], []>} : vector<512x8xbf16>, vector<8x16xbf16>, vector<512x16xf32> -> vector<512x16xf32>
    %c0_3 = arith.constant 0 : index
    %c0_4 = arith.constant 0 : index
    %3 = vector.load %arg3[%c0_3, %c0_4] : memref<1x16xf32, #tpu.memory_space<vmem>>, vector<1x16xf32>
    %4 = vector.broadcast %3 : vector<1x16xf32> to vector<512x16xf32>
    %5 = arith.addf %2, %4 : vector<512x16xf32>
    %cst_5 = arith.constant 0.000000e+00 : f32
    %6 = vector.broadcast %cst_5 : f32 to vector<512x16xf32>
    %7 = arith.maximumf %5, %6 : vector<512x16xf32>
    %8 = arith.truncf %7 : vector<512x16xf32> to vector<512x16xbf16>
    %c0_6 = arith.constant 0 : index
    %c0_7 = arith.constant 0 : index
    %9 = vector.load %arg4[%c0_6, %c0_7] : memref<512x16xbf16, #tpu.memory_space<vmem>>, vector<512x16xbf16>
    tpu.vector_store %arg4[%c0_6, %c0_7], %8 {strides = array<i32>} : memref<512x16xbf16, #tpu.memory_space<vmem>>, vector<512x16xbf16>,
    return
  }
  func.func @transform_0(%arg0: i32) -> (i32, i32) {
    %c0_i32 = arith.constant 0 : i32
    %c0_i32_0 = arith.constant 0 : i32
    return %arg0, %c0_i32 : i32, i32
  }
  func.func @transform_1(%arg0: i32) -> (i32, i32) {
    %c0_i32 = arith.constant 0 : i32
    %c0_i32_0 = arith.constant 0 : i32
    %c0_i32_1 = arith.constant 0 : i32
    return %c0_i32, %c0_i32_0 : i32, i32
  }
  func.func @transform_2(%arg0: i32) -> (i32, i32) {
    %c0_i32 = arith.constant 0 : i32
    %c0_i32_0 = arith.constant 0 : i32
    %c0_i32_1 = arith.constant 0 : i32
    return %c0_i32, %c0_i32_0 : i32, i32
  }
  func.func @transform_3(%arg0: i32) -> (i32, i32) {
    %c0_i32 = arith.constant 0 : i32
    %c0_i32_0 = arith.constant 0 : i32
    return %arg0, %c0_i32 : i32, i32
  }
}

</mosaic_0001>

<bundles_post_ra>
// kernel: tpu_custom_call.1
= control target key start
LH: loop header
LB: loop body
LE: loop exit
PB: predicated region body
PF: predicated region fallthrough
CT: control target
= control target key end

     0   :  { %vm341_vm0 = vcmask 1043456   ;;  %vm244_vm1 = vcmask 64512   ;;  %vm642_vm2 = vcmask 125952   ;;  %s1383_s1 = inlined_call_operand.vmem [shape: bf16[8,16], index: 1, kind: input, shape index: {}]   ;;  %s1384_s0 = inlined_call_operand.vmem [shape: bf16[512,8], index: 0, kind: input, shape index: {}]   ;;  %s1385_s2 = inlined_call_operand.vmem [shape: f32[1,16], index: 2, kind: input, shape index: {}]   ;;  %s1386_s3 = inlined_call_operand.vmem [shape: bf16[512,16], index: 3, kind: output, shape index: {}]  }
   0x1   :  { %v79_v0 = vld [vmem:[%s1383_s1] sm:$0xf]  ;;  %v872_v6 = vld [vmem:[%s1384_s0 + $0x8] sm:$0xff]  ;;  %v873_v10 = vld [vmem:[%s1384_s0 + $0x10] sm:$0xff] }
   0x2   :  { %v343_v1 = vsel %vm341_vm0, %v79_v0, 0  ;;  %v871_v2 = vld [vmem:[%s1384_s0] sm:$0xff]  ;;  %v880_v7 = vld [vmem:[%s1384_s0 + $0x48] sm:$0xff]  ;;  %v881_v11 = vld [vmem:[%s1384_s0 + $0x50] sm:$0xff] }
   0x3   :  { %v879_v3 = vld [vmem:[%s1384_s0 + $0x40] sm:$0xff]  ;;  %352 = vmatpush.bf16.msra.mxu0 %v343_v1  ;;  %903 = vmatpush.bf16.msra.mxu1 %v343_v1  ;;  %v888_v8 = vld [vmem:[%s1384_s0 + $0x88] sm:$0xff]  ;;  %v889_v12 = vld [vmem:[%s1384_s0 + $0x90] sm:$0xff] }
   0x4   :  { %v887_v4 = vld [vmem:[%s1384_s0 + $0x80] sm:$0xff]  ;;  %904 = vmatpush.bf16.msra.mxu2 %v343_v1  ;;  %905 = vmatpush.bf16.msra.mxu3 %v343_v1  ;;  %v896_v9 = vld [vmem:[%s1384_s0 + $0xc8] sm:$0xff]  ;;  %v897_v13 = vld [vmem:[%s1384_s0 + $0xd0] sm:$0xff] }
   0x5   :  { %v895_v5 = vld [vmem:[%s1384_s0 + $0xc0] sm:$0xff]  ;;  %v874_v14 = vld [vmem:[%s1384_s0 + $0x18] sm:$0xff]  ;;  %v876_v22 = vld [vmem:[%s1384_s0 + $0x28] sm:$0xff] }
   0x6   :  { %839 = vmatmul.msk.bf16.vlgmr.msra.gmra.mxu0 %vm244_vm1, %v871_v2  ;;  %847 = vmatmul.msk.bf16.vlgmr.msra.gmra.mxu1 %vm244_vm1, %v879_v3  ;;  %v882_v15 = vld [vmem:[%s1384_s0 + $0x58] sm:$0xff]  ;;  %v875_v18 = vld [vmem:[%s1384_s0 + $0x20] sm:$0xff]  ;;  %v884_v23 = vld [vmem:[%s1384_s0 + $0x68] sm:$0xff] }
   0x7   :  { %855 = vmatmul.msk.bf16.vlgmr.msra.gmra.mxu2 %vm244_vm1, %v887_v4  ;;  %863 = vmatmul.msk.bf16.vlgmr.msra.gmra.mxu3 %vm244_vm1, %v895_v5  ;;  %v890_v16 = vld [vmem:[%s1384_s0 + $0x98] sm:$0xff]  ;;  %v883_v19 = vld [vmem:[%s1384_s0 + $0x60] sm:$0xff]  ;;  %v892_v24 = vld [vmem:[%s1384_s0 + $0xa8] sm:$0xff] }
   0x8   :  { %v898_v17 = vld [vmem:[%s1384_s0 + $0xd8] sm:$0xff]  ;;  %v891_v20 = vld [vmem:[%s1384_s0 + $0xa0] sm:$0xff]  ;;  %v900_v25 = vld [vmem:[%s1384_s0 + $0xe8] sm:$0xff] }
   0x9   :  { %v899_v21 = vld [vmem:[%s1384_s0 + $0xe0] sm:$0xff]  ;;  %v877_v26 = vld [vmem:[%s1384_s0 + $0x30] sm:$0xff]  ;;  %v878_v30 = vld [vmem:[%s1384_s0 + $0x38] sm:$0xff] }
   0xa   :  { %v885_v27 = vld [vmem:[%s1384_s0 + $0x70] sm:$0xff]  ;;  %v886_v31 = vld [vmem:[%s1384_s0 + $0x78] sm:$0xff]  ;;  %v1061_v34 = vld [vmem:[%s1385_s2] ss:$0 sm:$0xff] }
   0xb   :  { %v893_v28 = vld [vmem:[%s1384_s0 + $0xb0] sm:$0xff]  ;;  %v894_v32 = vld [vmem:[%s1384_s0 + $0xb8] sm:$0xff] }
   0xc   :  { %v901_v29 = vld [vmem:[%s1384_s0 + $0xf0] sm:$0xff]  ;;  %v902_v33 = vld [vmem:[%s1384_s0 + $0xf8] sm:$0xff] }
  0x16   :  { %840 = vmatmul.msk.bf16.gmra.mxu0 %vm244_vm1, %v872_v6  ;;  %848 = vmatmul.msk.bf16.gmra.mxu1 %vm244_vm1, %v880_v7 }
  0x17   :  { %856 = vmatmul.msk.bf16.gmra.mxu2 %vm244_vm1, %v888_v8  ;;  %864 = vmatmul.msk.bf16.gmra.mxu3 %vm244_vm1, %v896_v9 }
  0x26   :  { %841 = vmatmul.msk.bf16.gmra.mxu0 %vm244_vm1, %v873_v10  ;;  %849 = vmatmul.msk.bf16.gmra.mxu1 %vm244_vm1, %v881_v11 }
  0x27   :  { %857 = vmatmul.msk.bf16.gmra.mxu2 %vm244_vm1, %v889_v12  ;;  %865 = vmatmul.msk.bf16.gmra.mxu3 %vm244_vm1, %v897_v13 }
  0x36   :  { %842 = vmatmul.msk.bf16.gmra.mxu0 %vm244_vm1, %v874_v14  ;;  %850 = vmatmul.msk.bf16.gmra.mxu1 %vm244_vm1, %v882_v15 }
  0x37   :  { %858 = vmatmul.msk.bf16.gmra.mxu2 %vm244_vm1, %v890_v16  ;;  %866 = vmatmul.msk.bf16.gmra.mxu3 %vm244_vm1, %v898_v17 }
  0x46   :  { %843 = vmatmul.msk.bf16.gmra.mxu0 %vm244_vm1, %v875_v18  ;;  %851 = vmatmul.msk.bf16.gmra.mxu1 %vm244_vm1, %v883_v19 }
  0x47   :  { %859 = vmatmul.msk.bf16.gmra.mxu2 %vm244_vm1, %v891_v20  ;;  %867 = vmatmul.msk.bf16.gmra.mxu3 %vm244_vm1, %v899_v21 }
  0x56   :  { %844 = vmatmul.msk.bf16.gmra.mxu0 %vm244_vm1, %v876_v22  ;;  %852 = vmatmul.msk.bf16.gmra.mxu1 %vm244_vm1, %v884_v23 }
  0x57   :  { %860 = vmatmul.msk.bf16.gmra.mxu2 %vm244_vm1, %v892_v24  ;;  %868 = vmatmul.msk.bf16.gmra.mxu3 %vm244_vm1, %v900_v25 }
  0x66   :  { %845 = vmatmul.msk.bf16.gmra.mxu0 %vm244_vm1, %v877_v26  ;;  %853 = vmatmul.msk.bf16.gmra.mxu1 %vm244_vm1, %v885_v27 }
  0x67   :  { %861 = vmatmul.msk.bf16.gmra.mxu2 %vm244_vm1, %v893_v28  ;;  %869 = vmatmul.msk.bf16.gmra.mxu3 %vm244_vm1, %v901_v29 }
  0x76   :  { %846 = vmatmul.msk.bf16.gmra.mxu0 %vm244_vm1, %v878_v30  ;;  %854 = vmatmul.msk.bf16.gmra.mxu1 %vm244_vm1, %v886_v31 }
  0x77   :  { %862 = vmatmul.msk.bf16.gmra.mxu2 %vm244_vm1, %v894_v32  ;;  %870 = vmatmul.msk.bf16.gmra.mxu3 %vm244_vm1, %v902_v33 }
  0x83   :  { %v354_v35 = vpop.f32.mrf.mxu0  ;;  %v394_v36 = vpop.f32.mrf.mxu1 }
  0x84   :  { %v355_v37 = vadd.f32 %v1061_v34, %v354_v35  ;;  %v395_v38 = vadd.f32 %v1061_v34, %v394_v36 }
  0x86   :  { %v514_v39 = vmax.f32 %v355_v37, 0.0  ;;  %v530_v40 = vmax.f32 %v395_v38, 0.0 }
  0x88   :  { %v578_v41 = vpack.c.bf16 %v514_v39, %v514_v39  ;;  %v594_v42 = vpack.c.bf16 %v530_v40, %v530_v40 }
  0x8a   :  { %643 = vst.msk [vmem:[%s1386_s3] sm:$0xf] %vm642_vm2, %v578_v41  ;;  %v434_v43 = vpop.f32.mrf.mxu2  ;;  %v474_v44 = vpop.f32.mrf.mxu3 }
  0x8b   :  { %659 = vst.msk [vmem:[%s1386_s3 + $0x40] sm:$0xf] %vm642_vm2, %v594_v42  ;;  %v435_v45 = vadd.f32 %v1061_v34, %v434_v43  ;;  %v475_v46 = vadd.f32 %v1061_v34, %v474_v44  ;;  %v356_v47 = vpop.f32.mrf.mxu0  ;;  %v396_v48 = vpop.f32.mrf.mxu1 }
  0x8c   :  { %v357_v49 = vadd.f32 %v1061_v34, %v356_v47  ;;  %v397_v50 = vadd.f32 %v1061_v34, %v396_v48 }
  0x8d   :  { %v546_v51 = vmax.f32 %v435_v45, 0.0  ;;  %v562_v52 = vmax.f32 %v475_v46, 0.0 }
  0x8e   :  { %v515_v53 = vmax.f32 %v357_v49, 0.0  ;;  %v531_v54 = vmax.f32 %v397_v50, 0.0 }
  0x8f   :  { %v610_v55 = vpack.c.bf16 %v546_v51, %v546_v51  ;;  %v626_v56 = vpack.c.bf16 %v562_v52, %v562_v52 }
  0x90   :  { %v579_v57 = vpack.c.bf16 %v515_v53, %v515_v53  ;;  %v595_v58 = vpack.c.bf16 %v531_v54, %v531_v54 }
  0x91   :  { %675 = vst.msk [vmem:[%s1386_s3 + $0x80] sm:$0xf] %vm642_vm2, %v610_v55 }
  0x92   :  { %691 = vst.msk [vmem:[%s1386_s3 + $0xc0] sm:$0xf] %vm642_vm2, %v626_v56  ;;  %v436_v59 = vpop.f32.mrf.mxu2  ;;  %v476_v60 = vpop.f32.mrf.mxu3 }
  0x93   :  { %644 = vst.msk [vmem:[%s1386_s3 + $0x4] sm:$0xf] %vm642_vm2, %v579_v57  ;;  %v437_v61 = vadd.f32 %v1061_v34, %v436_v59  ;;  %v477_v62 = vadd.f32 %v1061_v34, %v476_v60  ;;  %v359_v63 = vpop.f32.mrf.mxu0  ;;  %v399_v0 = vpop.f32.mrf.mxu1 }
  0x94   :  { %660 = vst.msk [vmem:[%s1386_s3 + $0x44] sm:$0xf] %vm642_vm2, %v595_v58  ;;  %v360_v1 = vadd.f32 %v1061_v34, %v359_v63  ;;  %v400_v2 = vadd.f32 %v1061_v34, %v399_v0 }
  0x95   :  { %v547_v3 = vmax.f32 %v437_v61, 0.0  ;;  %v563_v4 = vmax.f32 %v477_v62, 0.0 }
  0x96   :  { %v516_v5 = vmax.f32 %v360_v1, 0.0  ;;  %v532_v6 = vmax.f32 %v400_v2, 0.0 }
  0x97   :  { %v611_v7 = vpack.c.bf16 %v547_v3, %v547_v3  ;;  %v627_v8 = vpack.c.bf16 %v563_v4, %v563_v4 }
  0x98   :  { %v580_v9 = vpack.c.bf16 %v516_v5, %v516_v5  ;;  %v596_v10 = vpack.c.bf16 %v532_v6, %v532_v6 }
  0x99   :  { %676 = vst.msk [vmem:[%s1386_s3 + $0x84] sm:$0xf] %vm642_vm2, %v611_v7 }
  0x9a   :  { %692 = vst.msk [vmem:[%s1386_s3 + $0xc4] sm:$0xf] %vm642_vm2, %v627_v8  ;;  %v439_v11 = vpop.f32.mrf.mxu2  ;;  %v479_v12 = vpop.f32.mrf.mxu3 }
  0x9b   :  { %645 = vst.msk [vmem:[%s1386_s3 + $0x8] sm:$0xf] %vm642_vm2, %v580_v9  ;;  %v440_v13 = vadd.f32 %v1061_v34, %v439_v11  ;;  %v480_v14 = vadd.f32 %v1061_v34, %v479_v12  ;;  %v361_v15 = vpop.f32.mrf.mxu0  ;;  %v401_v16 = vpop.f32.mrf.mxu1 }
  0x9c   :  { %661 = vst.msk [vmem:[%s1386_s3 + $0x48] sm:$0xf] %vm642_vm2, %v596_v10  ;;  %v362_v17 = vadd.f32 %v1061_v34, %v361_v15  ;;  %v402_v18 = vadd.f32 %v1061_v34, %v401_v16 }
  0x9d   :  { %v548_v19 = vmax.f32 %v440_v13, 0.0  ;;  %v564_v20 = vmax.f32 %v480_v14, 0.0 }
  0x9e   :  { %v517_v21 = vmax.f32 %v362_v17, 0.0  ;;  %v533_v22 = vmax.f32 %v402_v18, 0.0 }
  0x9f   :  { %v612_v23 = vpack.c.bf16 %v548_v19, %v548_v19  ;;  %v628_v24 = vpack.c.bf16 %v564_v20, %v564_v20 }
  0xa0   :  { %v581_v25 = vpack.c.bf16 %v517_v21, %v517_v21  ;;  %v597_v26 = vpack.c.bf16 %v533_v22, %v533_v22 }
  0xa1   :  { %677 = vst.msk [vmem:[%s1386_s3 + $0x88] sm:$0xf] %vm642_vm2, %v612_v23 }
  0xa2   :  { %693 = vst.msk [vmem:[%s1386_s3 + $0xc8] sm:$0xf] %vm642_vm2, %v628_v24  ;;  %v441_v27 = vpop.f32.mrf.mxu2  ;;  %v481_v28 = vpop.f32.mrf.mxu3 }
  0xa3   :  { %646 = vst.msk [vmem:[%s1386_s3 + $0xc] sm:$0xf] %vm642_vm2, %v581_v25  ;;  %v442_v29 = vadd.f32 %v1061_v34, %v441_v27  ;;  %v482_v30 = vadd.f32 %v1061_v34, %v481_v28  ;;  %v364_v31 = vpop.f32.mrf.mxu0  ;;  %v404_v32 = vpop.f32.mrf.mxu1 }
  0xa4   :  { %662 = vst.msk [vmem:[%s1386_s3 + $0x4c] sm:$0xf] %vm642_vm2, %v597_v26  ;;  %v365_v33 = vadd.f32 %v1061_v34, %v364_v31  ;;  %v405_v35 = vadd.f32 %v1061_v34, %v404_v32 }
  0xa5   :  { %v549_v36 = vmax.f32 %v442_v29, 0.0  ;;  %v565_v37 = vmax.f32 %v482_v30, 0.0 }
  0xa6   :  { %v518_v38 = vmax.f32 %v365_v33, 0.0  ;;  %v534_v39 = vmax.f32 %v405_v35, 0.0 }
  0xa7   :  { %v613_v40 = vpack.c.bf16 %v549_v36, %v549_v36  ;;  %v629_v41 = vpack.c.bf16 %v565_v37, %v565_v37 }
  0xa8   :  { %v582_v42 = vpack.c.bf16 %v518_v38, %v518_v38  ;;  %v598_v43 = vpack.c.bf16 %v534_v39, %v534_v39 }
  0xa9   :  { %678 = vst.msk [vmem:[%s1386_s3 + $0x8c] sm:$0xf] %vm642_vm2, %v613_v40 }
  0xaa   :  { %694 = vst.msk [vmem:[%s1386_s3 + $0xcc] sm:$0xf] %vm642_vm2, %v629_v41  ;;  %v444_v44 = vpop.f32.mrf.mxu2  ;;  %v484_v45 = vpop.f32.mrf.mxu3 }
  0xab   :  { %647 = vst.msk [vmem:[%s1386_s3 + $0x10] sm:$0xf] %vm642_vm2, %v582_v42  ;;  %v445_v46 = vadd.f32 %v1061_v34, %v444_v44  ;;  %v485_v47 = vadd.f32 %v1061_v34, %v484_v45  ;;  %v366_v48 = vpop.f32.mrf.mxu0  ;;  %v406_v49 = vpop.f32.mrf.mxu1 }
  0xac   :  { %663 = vst.msk [vmem:[%s1386_s3 + $0x50] sm:$0xf] %vm642_vm2, %v598_v43  ;;  %v367_v50 = vadd.f32 %v1061_v34, %v366_v48  ;;  %v407_v51 = vadd.f32 %v1061_v34, %v406_v49 }
  0xad   :  { %v550_v52 = vmax.f32 %v445_v46, 0.0  ;;  %v566_v53 = vmax.f32 %v485_v47, 0.0 }
  0xae   :  { %v519_v54 = vmax.f32 %v367_v50, 0.0  ;;  %v535_v55 = vmax.f32 %v407_v51, 0.0 }
  0xaf   :  { %v614_v56 = vpack.c.bf16 %v550_v52, %v550_v52  ;;  %v630_v57 = vpack.c.bf16 %v566_v53, %v566_v53 }
  0xb0   :  { %v583_v58 = vpack.c.bf16 %v519_v54, %v519_v54  ;;  %v599_v59 = vpack.c.bf16 %v535_v55, %v535_v55 }
  0xb1   :  { %679 = vst.msk [vmem:[%s1386_s3 + $0x90] sm:$0xf] %vm642_vm2, %v614_v56 }
  0xb2   :  { %695 = vst.msk [vmem:[%s1386_s3 + $0xd0] sm:$0xf] %vm642_vm2, %v630_v57  ;;  %v446_v60 = vpop.f32.mrf.mxu2  ;;  %v486_v61 = vpop.f32.mrf.mxu3 }
  0xb3   :  { %648 = vst.msk [vmem:[%s1386_s3 + $0x14] sm:$0xf] %vm642_vm2, %v583_v58  ;;  %v447_v62 = vadd.f32 %v1061_v34, %v446_v60  ;;  %v487_v63 = vadd.f32 %v1061_v34, %v486_v61  ;;  %v369_v0 = vpop.f32.mrf.mxu0  ;;  %v409_v1 = vpop.f32.mrf.mxu1 }
  0xb4   :  { %664 = vst.msk [vmem:[%s1386_s3 + $0x54] sm:$0xf] %vm642_vm2, %v599_v59  ;;  %v370_v2 = vadd.f32 %v1061_v34, %v369_v0  ;;  %v410_v3 = vadd.f32 %v1061_v34, %v409_v1 }
  0xb5   :  { %v551_v4 = vmax.f32 %v447_v62, 0.0  ;;  %v567_v5 = vmax.f32 %v487_v63, 0.0 }
  0xb6   :  { %v520_v6 = vmax.f32 %v370_v2, 0.0  ;;  %v536_v7 = vmax.f32 %v410_v3, 0.0 }
  0xb7   :  { %v615_v8 = vpack.c.bf16 %v551_v4, %v551_v4  ;;  %v631_v9 = vpack.c.bf16 %v567_v5, %v567_v5 }
  0xb8   :  { %v584_v10 = vpack.c.bf16 %v520_v6, %v520_v6  ;;  %v600_v11 = vpack.c.bf16 %v536_v7, %v536_v7 }
  0xb9   :  { %680 = vst.msk [vmem:[%s1386_s3 + $0x94] sm:$0xf] %vm642_vm2, %v615_v8 }
  0xba   :  { %696 = vst.msk [vmem:[%s1386_s3 + $0xd4] sm:$0xf] %vm642_vm2, %v631_v9  ;;  %v449_v12 = vpop.f32.mrf.mxu2  ;;  %v489_v13 = vpop.f32.mrf.mxu3 }
  0xbb   :  { %649 = vst.msk [vmem:[%s1386_s3 + $0x18] sm:$0xf] %vm642_vm2, %v584_v10  ;;  %v450_v14 = vadd.f32 %v1061_v34, %v449_v12  ;;  %v490_v15 = vadd.f32 %v1061_v34, %v489_v13  ;;  %v371_v16 = vpop.f32.mrf.mxu0  ;;  %v411_v17 = vpop.f32.mrf.mxu1 }
  0xbc   :  { %665 = vst.msk [vmem:[%s1386_s3 + $0x58] sm:$0xf] %vm642_vm2, %v600_v11  ;;  %v372_v18 = vadd.f32 %v1061_v34, %v371_v16  ;;  %v412_v19 = vadd.f32 %v1061_v34, %v411_v17 }
  0xbd   :  { %v552_v20 = vmax.f32 %v450_v14, 0.0  ;;  %v568_v21 = vmax.f32 %v490_v15, 0.0 }
  0xbe   :  { %v521_v22 = vmax.f32 %v372_v18, 0.0  ;;  %v537_v23 = vmax.f32 %v412_v19, 0.0 }
  0xbf   :  { %v616_v24 = vpack.c.bf16 %v552_v20, %v552_v20  ;;  %v632_v25 = vpack.c.bf16 %v568_v21, %v568_v21 }
  0xc0   :  { %v585_v26 = vpack.c.bf16 %v521_v22, %v521_v22  ;;  %v601_v27 = vpack.c.bf16 %v537_v23, %v537_v23 }
  0xc1   :  { %681 = vst.msk [vmem:[%s1386_s3 + $0x98] sm:$0xf] %vm642_vm2, %v616_v24 }
  0xc2   :  { %697 = vst.msk [vmem:[%s1386_s3 + $0xd8] sm:$0xf] %vm642_vm2, %v632_v25  ;;  %v451_v28 = vpop.f32.mrf.mxu2  ;;  %v491_v29 = vpop.f32.mrf.mxu3 }
  0xc3   :  { %650 = vst.msk [vmem:[%s1386_s3 + $0x1c] sm:$0xf] %vm642_vm2, %v585_v26  ;;  %v452_v30 = vadd.f32 %v1061_v34, %v451_v28  ;;  %v492_v31 = vadd.f32 %v1061_v34, %v491_v29  ;;  %v374_v32 = vpop.f32.mrf.mxu0  ;;  %v414_v33 = vpop.f32.mrf.mxu1 }
  0xc4   :  { %666 = vst.msk [vmem:[%s1386_s3 + $0x5c] sm:$0xf] %vm642_vm2, %v601_v27  ;;  %v375_v35 = vadd.f32 %v1061_v34, %v374_v32  ;;  %v415_v36 = vadd.f32 %v1061_v34, %v414_v33 }
  0xc5   :  { %v553_v37 = vmax.f32 %v452_v30, 0.0  ;;  %v569_v38 = vmax.f32 %v492_v31, 0.0 }
  0xc6   :  { %v522_v39 = vmax.f32 %v375_v35, 0.0  ;;  %v538_v40 = vmax.f32 %v415_v36, 0.0 }
  0xc7   :  { %v617_v41 = vpack.c.bf16 %v553_v37, %v553_v37  ;;  %v633_v42 = vpack.c.bf16 %v569_v38, %v569_v38 }
  0xc8   :  { %v586_v43 = vpack.c.bf16 %v522_v39, %v522_v39  ;;  %v602_v44 = vpack.c.bf16 %v538_v40, %v538_v40 }
  0xc9   :  { %682 = vst.msk [vmem:[%s1386_s3 + $0x9c] sm:$0xf] %vm642_vm2, %v617_v41 }
  0xca   :  { %698 = vst.msk [vmem:[%s1386_s3 + $0xdc] sm:$0xf] %vm642_vm2, %v633_v42  ;;  %v454_v45 = vpop.f32.mrf.mxu2  ;;  %v494_v46 = vpop.f32.mrf.mxu3 }
  0xcb   :  { %651 = vst.msk [vmem:[%s1386_s3 + $0x20] sm:$0xf] %vm642_vm2, %v586_v43  ;;  %v455_v47 = vadd.f32 %v1061_v34, %v454_v45  ;;  %v495_v48 = vadd.f32 %v1061_v34, %v494_v46  ;;  %v376_v49 = vpop.f32.mrf.mxu0  ;;  %v416_v50 = vpop.f32.mrf.mxu1 }
  0xcc   :  { %667 = vst.msk [vmem:[%s1386_s3 + $0x60] sm:$0xf] %vm642_vm2, %v602_v44  ;;  %v377_v51 = vadd.f32 %v1061_v34, %v376_v49  ;;  %v417_v52 = vadd.f32 %v1061_v34, %v416_v50 }
  0xcd   :  { %v554_v53 = vmax.f32 %v455_v47, 0.0  ;;  %v570_v54 = vmax.f32 %v495_v48, 0.0 }
  0xce   :  { %v523_v55 = vmax.f32 %v377_v51, 0.0  ;;  %v539_v56 = vmax.f32 %v417_v52, 0.0 }
  0xcf   :  { %v618_v57 = vpack.c.bf16 %v554_v53, %v554_v53  ;;  %v634_v58 = vpack.c.bf16 %v570_v54, %v570_v54 }
  0xd0   :  { %v587_v59 = vpack.c.bf16 %v523_v55, %v523_v55  ;;  %v603_v60 = vpack.c.bf16 %v539_v56, %v539_v56 }
  0xd1   :  { %683 = vst.msk [vmem:[%s1386_s3 + $0xa0] sm:$0xf] %vm642_vm2, %v618_v57 }
  0xd2   :  { %699 = vst.msk [vmem:[%s1386_s3 + $0xe0] sm:$0xf] %vm642_vm2, %v634_v58  ;;  %v456_v61 = vpop.f32.mrf.mxu2  ;;  %v496_v62 = vpop.f32.mrf.mxu3 }
  0xd3   :  { %652 = vst.msk [vmem:[%s1386_s3 + $0x24] sm:$0xf] %vm642_vm2, %v587_v59  ;;  %v457_v63 = vadd.f32 %v1061_v34, %v456_v61  ;;  %v497_v0 = vadd.f32 %v1061_v34, %v496_v62  ;;  %v379_v1 = vpop.f32.mrf.mxu0  ;;  %v419_v2 = vpop.f32.mrf.mxu1 }
  0xd4   :  { %668 = vst.msk [vmem:[%s1386_s3 + $0x64] sm:$0xf] %vm642_vm2, %v603_v60  ;;  %v380_v3 = vadd.f32 %v1061_v34, %v379_v1  ;;  %v420_v4 = vadd.f32 %v1061_v34, %v419_v2 }
  0xd5   :  { %v555_v5 = vmax.f32 %v457_v63, 0.0  ;;  %v571_v6 = vmax.f32 %v497_v0, 0.0 }
  0xd6   :  { %v524_v7 = vmax.f32 %v380_v3, 0.0  ;;  %v540_v8 = vmax.f32 %v420_v4, 0.0 }
  0xd7   :  { %v619_v9 = vpack.c.bf16 %v555_v5, %v555_v5  ;;  %v635_v10 = vpack.c.bf16 %v571_v6, %v571_v6 }
  0xd8   :  { %v588_v11 = vpack.c.bf16 %v524_v7, %v524_v7  ;;  %v604_v12 = vpack.c.bf16 %v540_v8, %v540_v8 }
  0xd9   :  { %684 = vst.msk [vmem:[%s1386_s3 + $0xa4] sm:$0xf] %vm642_vm2, %v619_v9 }
  0xda   :  { %700 = vst.msk [vmem:[%s1386_s3 + $0xe4] sm:$0xf] %vm642_vm2, %v635_v10  ;;  %v459_v13 = vpop.f32.mrf.mxu2  ;;  %v499_v14 = vpop.f32.mrf.mxu3 }
  0xdb   :  { %653 = vst.msk [vmem:[%s1386_s3 + $0x28] sm:$0xf] %vm642_vm2, %v588_v11  ;;  %v460_v15 = vadd.f32 %v1061_v34, %v459_v13  ;;  %v500_v16 = vadd.f32 %v1061_v34, %v499_v14  ;;  %v381_v17 = vpop.f32.mrf.mxu0  ;;  %v421_v18 = vpop.f32.mrf.mxu1 }
  0xdc   :  { %669 = vst.msk [vmem:[%s1386_s3 + $0x68] sm:$0xf] %vm642_vm2, %v604_v12  ;;  %v382_v19 = vadd.f32 %v1061_v34, %v381_v17  ;;  %v422_v20 = vadd.f32 %v1061_v34, %v421_v18 }
  0xdd   :  { %v556_v21 = vmax.f32 %v460_v15, 0.0  ;;  %v572_v22 = vmax.f32 %v500_v16, 0.0 }
  0xde   :  { %v525_v23 = vmax.f32 %v382_v19, 0.0  ;;  %v541_v24 = vmax.f32 %v422_v20, 0.0 }
  0xdf   :  { %v620_v25 = vpack.c.bf16 %v556_v21, %v556_v21  ;;  %v636_v26 = vpack.c.bf16 %v572_v22, %v572_v22 }
  0xe0   :  { %v589_v27 = vpack.c.bf16 %v525_v23, %v525_v23  ;;  %v605_v28 = vpack.c.bf16 %v541_v24, %v541_v24 }
  0xe1   :  { %685 = vst.msk [vmem:[%s1386_s3 + $0xa8] sm:$0xf] %vm642_vm2, %v620_v25 }
  0xe2   :  { %701 = vst.msk [vmem:[%s1386_s3 + $0xe8] sm:$0xf] %vm642_vm2, %v636_v26  ;;  %v461_v29 = vpop.f32.mrf.mxu2  ;;  %v501_v30 = vpop.f32.mrf.mxu3 }
  0xe3   :  { %654 = vst.msk [vmem:[%s1386_s3 + $0x2c] sm:$0xf] %vm642_vm2, %v589_v27  ;;  %v462_v31 = vadd.f32 %v1061_v34, %v461_v29  ;;  %v502_v32 = vadd.f32 %v1061_v34, %v501_v30  ;;  %v384_v33 = vpop.f32.mrf.mxu0  ;;  %v424_v35 = vpop.f32.mrf.mxu1 }
  0xe4   :  { %670 = vst.msk [vmem:[%s1386_s3 + $0x6c] sm:$0xf] %vm642_vm2, %v605_v28  ;;  %v385_v36 = vadd.f32 %v1061_v34, %v384_v33  ;;  %v425_v37 = vadd.f32 %v1061_v34, %v424_v35 }
  0xe5   :  { %v557_v38 = vmax.f32 %v462_v31, 0.0  ;;  %v573_v39 = vmax.f32 %v502_v32, 0.0 }
  0xe6   :  { %v526_v40 = vmax.f32 %v385_v36, 0.0  ;;  %v542_v41 = vmax.f32 %v425_v37, 0.0 }
  0xe7   :  { %v621_v42 = vpack.c.bf16 %v557_v38, %v557_v38  ;;  %v637_v43 = vpack.c.bf16 %v573_v39, %v573_v39 }
  0xe8   :  { %v590_v44 = vpack.c.bf16 %v526_v40, %v526_v40  ;;  %v606_v45 = vpack.c.bf16 %v542_v41, %v542_v41 }
  0xe9   :  { %686 = vst.msk [vmem:[%s1386_s3 + $0xac] sm:$0xf] %vm642_vm2, %v621_v42 }
  0xea   :  { %702 = vst.msk [vmem:[%s1386_s3 + $0xec] sm:$0xf] %vm642_vm2, %v637_v43  ;;  %v464_v46 = vpop.f32.mrf.mxu2  ;;  %v504_v47 = vpop.f32.mrf.mxu3 }
  0xeb   :  { %655 = vst.msk [vmem:[%s1386_s3 + $0x30] sm:$0xf] %vm642_vm2, %v590_v44  ;;  %v465_v48 = vadd.f32 %v1061_v34, %v464_v46  ;;  %v505_v49 = vadd.f32 %v1061_v34, %v504_v47  ;;  %v386_v50 = vpop.f32.mrf.mxu0  ;;  %v426_v51 = vpop.f32.mrf.mxu1 }
  0xec   :  { %671 = vst.msk [vmem:[%s1386_s3 + $0x70] sm:$0xf] %vm642_vm2, %v606_v45  ;;  %v387_v52 = vadd.f32 %v1061_v34, %v386_v50  ;;  %v427_v53 = vadd.f32 %v1061_v34, %v426_v51 }
  0xed   :  { %v558_v54 = vmax.f32 %v465_v48, 0.0  ;;  %v574_v55 = vmax.f32 %v505_v49, 0.0 }
  0xee   :  { %v527_v56 = vmax.f32 %v387_v52, 0.0  ;;  %v543_v57 = vmax.f32 %v427_v53, 0.0 }
  0xef   :  { %v622_v58 = vpack.c.bf16 %v558_v54, %v558_v54  ;;  %v638_v59 = vpack.c.bf16 %v574_v55, %v574_v55 }
  0xf0   :  { %v591_v60 = vpack.c.bf16 %v527_v56, %v527_v56  ;;  %v607_v61 = vpack.c.bf16 %v543_v57, %v543_v57 }
  0xf1   :  { %687 = vst.msk [vmem:[%s1386_s3 + $0xb0] sm:$0xf] %vm642_vm2, %v622_v58 }
  0xf2   :  { %703 = vst.msk [vmem:[%s1386_s3 + $0xf0] sm:$0xf] %vm642_vm2, %v638_v59  ;;  %v466_v62 = vpop.f32.mrf.mxu2  ;;  %v506_v63 = vpop.f32.mrf.mxu3 }
  0xf3   :  { %656 = vst.msk [vmem:[%s1386_s3 + $0x34] sm:$0xf] %vm642_vm2, %v591_v60  ;;  %v467_v0 = vadd.f32 %v1061_v34, %v466_v62  ;;  %v507_v1 = vadd.f32 %v1061_v34, %v506_v63  ;;  %v389_v2 = vpop.f32.mrf.mxu0  ;;  %v429_v3 = vpop.f32.mrf.mxu1 }
  0xf4   :  { %672 = vst.msk [vmem:[%s1386_s3 + $0x74] sm:$0xf] %vm642_vm2, %v607_v61  ;;  %v390_v4 = vadd.f32 %v1061_v34, %v389_v2  ;;  %v430_v5 = vadd.f32 %v1061_v34, %v429_v3 }
  0xf5   :  { %v559_v6 = vmax.f32 %v467_v0, 0.0  ;;  %v575_v7 = vmax.f32 %v507_v1, 0.0 }
  0xf6   :  { %v528_v8 = vmax.f32 %v390_v4, 0.0  ;;  %v544_v9 = vmax.f32 %v430_v5, 0.0 }
  0xf7   :  { %v623_v10 = vpack.c.bf16 %v559_v6, %v559_v6  ;;  %v639_v11 = vpack.c.bf16 %v575_v7, %v575_v7 }
  0xf8   :  { %v592_v12 = vpack.c.bf16 %v528_v8, %v528_v8  ;;  %v608_v13 = vpack.c.bf16 %v544_v9, %v544_v9 }
  0xf9   :  { %688 = vst.msk [vmem:[%s1386_s3 + $0xb4] sm:$0xf] %vm642_vm2, %v623_v10 }
  0xfa   :  { %704 = vst.msk [vmem:[%s1386_s3 + $0xf4] sm:$0xf] %vm642_vm2, %v639_v11  ;;  %v469_v14 = vpop.f32.mrf.mxu2  ;;  %v509_v15 = vpop.f32.mrf.mxu3 }
  0xfb   :  { %657 = vst.msk [vmem:[%s1386_s3 + $0x38] sm:$0xf] %vm642_vm2, %v592_v12  ;;  %v470_v16 = vadd.f32 %v1061_v34, %v469_v14  ;;  %v510_v17 = vadd.f32 %v1061_v34, %v509_v15  ;;  %v391_v18 = vpop.f32.mrf.mxu0  ;;  %v431_v19 = vpop.f32.mrf.mxu1 }
  0xfc   :  { %673 = vst.msk [vmem:[%s1386_s3 + $0x78] sm:$0xf] %vm642_vm2, %v608_v13  ;;  %v392_v20 = vadd.f32 %v1061_v34, %v391_v18  ;;  %v432_v21 = vadd.f32 %v1061_v34, %v431_v19 }
  0xfd   :  { %v560_v22 = vmax.f32 %v470_v16, 0.0  ;;  %v576_v23 = vmax.f32 %v510_v17, 0.0 }
  0xfe   :  { %v529_v24 = vmax.f32 %v392_v20, 0.0  ;;  %v545_v25 = vmax.f32 %v432_v21, 0.0 }
  0xff   :  { %v624_v26 = vpack.c.bf16 %v560_v22, %v560_v22  ;;  %v640_v27 = vpack.c.bf16 %v576_v23, %v576_v23 }
 0x100   :  { %v593_v28 = vpack.c.bf16 %v529_v24, %v529_v24  ;;  %v609_v29 = vpack.c.bf16 %v545_v25, %v545_v25 }
 0x101   :  { %689 = vst.msk [vmem:[%s1386_s3 + $0xb8] sm:$0xf] %vm642_vm2, %v624_v26 }
 0x102   :  { %705 = vst.msk [vmem:[%s1386_s3 + $0xf8] sm:$0xf] %vm642_vm2, %v640_v27  ;;  %v471_v30 = vpop.f32.mrf.mxu2  ;;  %v511_v31 = vpop.f32.mrf.mxu3 }
 0x103   :  { %658 = vst.msk [vmem:[%s1386_s3 + $0x3c] sm:$0xf] %vm642_vm2, %v593_v28  ;;  %v472_v32 = vadd.f32 %v1061_v34, %v471_v30  ;;  %v512_v33 = vadd.f32 %v1061_v34, %v511_v31 }
 0x104   :  { %674 = vst.msk [vmem:[%s1386_s3 + $0x7c] sm:$0xf] %vm642_vm2, %v609_v29 }
 0x105   :  { %v561_v35 = vmax.f32 %v472_v32, 0.0  ;;  %v577_v36 = vmax.f32 %v512_v33, 0.0 }
 0x107   :  { %v625_v37 = vpack.c.bf16 %v561_v35, %v561_v35  ;;  %v641_v38 = vpack.c.bf16 %v577_v36, %v577_v36 }
 0x109   :  { %690 = vst.msk [vmem:[%s1386_s3 + $0xbc] sm:$0xf] %vm642_vm2, %v625_v37 }
 0x10a   :  { %706 = vst.msk [vmem:[%s1386_s3 + $0xfc] sm:$0xf] %vm642_vm2, %v641_v38 }

</bundles_post_ra>
